<compile_context>
chip_gen: v7x
topology: tpu7x:2x2x1
jax: 0.10.0
libtpu: 0.0.40
codegen_flags: <defaults>
</compile_context>

<pallas_src>
import jax
import jax.numpy as jnp
from jax.experimental import pallas as pl
from jax.experimental.pallas import tpu as pltpu


def _linear_relu_kernel(x_ref, w_ref, b_ref, o_ref):
    # x_ref: [tm, F] f32      w_ref: [F, D] bf16 (VMEM-resident across steps)
    # b_ref: [1, D]  f32      o_ref: [tm, D] f32
    x = x_ref[...].astype(w_ref.dtype)            # in-register VPU cast
    acc = jnp.dot(x, w_ref[...], preferred_element_type=jnp.float32)
    o_ref[...] = jnp.maximum(acc + b_ref[...], 0.0).astype(o_ref.dtype)


def make_linear_encoder(weight, bias, *, tile_m=1024, compute_dtype=jnp.bfloat16):
    """Build the forward fn. weight: [D, F] (torch nn.Linear layout), bias: [D].

    Parameter transpose / dtype cast happens exactly once here, not per call.
    """
    D, F = weight.shape
    assert tile_m % 8 == 0, "tile_m must be sublane-aligned (multiple of 8)"

    w_t = jnp.asarray(weight).T.astype(compute_dtype)            # (F, D)
    b_p = jnp.asarray(bias).astype(jnp.float32).reshape(1, D)    # (1, D)

    @jax.jit
    def forward(game_state):
        B = game_state.shape[0]
        # Row-major flatten == torch .view(-1, C*H*W)
        x = game_state.reshape(B, F).astype(jnp.float32)

        # Tile selection:
        #   B >= tile_m : tm = tile_m (8-aligned); ragged tail handled by the
        #                 cdiv grid + Pallas masked stores on the last block.
        #   B <  tile_m : single full-extent block (legal for any B since the
        #                 block equals the full array dim).
        tm = tile_m if B >= tile_m else B
        grid = (pl.cdiv(B, tm),)

        out = pl.pallas_call(
            _linear_relu_kernel,
            out_shape=jax.ShapeDtypeStruct((B, D), jnp.float32),
            grid_spec=pltpu.PrefetchScalarGridSpec(
                num_scalar_prefetch=0,
                grid=grid,
                in_specs=[
                    pl.BlockSpec((tm, F), lambda i: (i, 0)),   # activations: tiled over batch
                    pl.BlockSpec((F, D), lambda i: (0, 0)),    # weight: VMEM-resident
                    pl.BlockSpec((1, D), lambda i: (0, 0)),    # bias:   VMEM-resident
                ],
                out_specs=pl.BlockSpec((tm, D), lambda i: (i, 0)),
            ),
            compiler_params=pltpu.CompilerParams(
                dimension_semantics=("parallel",),             # shard batch tiles across cores
            ),
        )(x, w_t, b_p)

        return out

    return forward


def reference_forward(game_state, weight, bias):
    x = game_state.reshape(game_state.shape[0], -1)
    return jnp.maximum(x @ weight.T + bias, 0.0)


if __name__ == "__main__":
    # config: game_size=8, num_history=4, encoding_dim=32
    B, C, H, W = 2, 4, 8, 8
    D = 32
    F_in = C * H * W

    key = jax.random.PRNGKey(0)
    k_x, k_w, k_b, k_x2, k_x3 = jax.random.split(key, 5)

    game_state = jax.random.normal(k_x, (B, C, H, W), dtype=jnp.float32)

    # Deterministic init mimicking nn.Linear default (uniform +-1/sqrt(fan_in)).
    bound = 1.0 / (F_in ** 0.5)
    weight = jax.random.uniform(k_w, (D, F_in), minval=-bound, maxval=bound,
                                dtype=jnp.float32)
    bias = jax.random.uniform(k_b, (D,), minval=-bound, maxval=bound,
                              dtype=jnp.float32)

    encoder = make_linear_encoder(weight, bias)

    # --- small batch (single full-extent block) ---
    out = jax.block_until_ready(encoder(game_state))
    assert out.shape == (B, D)
    assert out.dtype == jnp.float32

    # Loose check vs the f32 PyTorch-equivalent reference (kernel runs bf16
    # matmul with f32 accumulation).
    ref_f32 = reference_forward(game_state, weight, bias)
    assert jnp.allclose(out, ref_f32, atol=5e-2, rtol=5e-2), "mismatch vs f32 reference"

    # Tight check vs a matched-precision (bf16-input, f32-accumulate) reference.
    x2d = game_state.reshape(B, F_in)
    ref_bf16 = jnp.maximum(
        jnp.dot(x2d.astype(jnp.bfloat16), weight.T.astype(jnp.bfloat16),
                preferred_element_type=jnp.float32) + bias, 0.0)
    assert jnp.allclose(out, ref_bf16, atol=1e-3, rtol=1e-3), "mismatch vs bf16 reference"

    # --- mid batch, not a multiple of 8 (single full-extent block of 300) ---
    B2 = 300
    gs2 = jax.random.normal(k_x2, (B2, C, H, W), dtype=jnp.float32)
    out2 = jax.block_until_ready(encoder(gs2))
    ref2 = reference_forward(gs2, weight, bias)
    assert out2.shape == (B2, D)
    assert jnp.allclose(out2, ref2, atol=5e-2, rtol=5e-2), "mismatch on mid-batch path"

    # --- large ragged batch (multi-block grid with masked partial last block) ---
    B3 = 2100   # grid = 3 blocks of 1024 with a 52-row masked tail
    gs3 = jax.random.normal(k_x3, (B3, C, H, W), dtype=jnp.float32)
    out3 = jax.block_until_ready(encoder(gs3))
    ref3 = reference_forward(gs3, weight, bias)
    assert out3.shape == (B3, D)
    assert jnp.allclose(out3, ref3, atol=5e-2, rtol=5e-2), "mismatch on tiled ragged path"

    print("KERNEL_OK")
</pallas_src>

<mosaic_0001>
module attributes {stable_mosaic.version = 11 : i64} {
  func.func @_linear_relu_kernel(%arg0: i32, %arg1: memref<2x256xf32, #tpu.memory_space<vmem>>, %arg2: memref<256x32xbf16, #tpu.memory_space<vmem>>, %arg3: memref<1x32xf32, #tpu.memory_space<vmem>>, %arg4: memref<2x32xf32, #tpu.memory_space<vmem>>) attributes {dimension_semantics = [#tpu.dimension_semantics<parallel>], iteration_bounds = array<i64: 1>, scalar_prefetch = 0 : i64, scratch_operands = 0 : i64, tpu.core_type = #tpu.core_type<tc>, window_params = [{transform_indices = @transform_0, window_bounds = array<i64: 2, 256>}, {pipeline_mode = #tpu.pipeline_mode<synchronous>, transform_indices = @transform_1, window_bounds = array<i64: 256, 32>}, {pipeline_mode = #tpu.pipeline_mode<synchronous>, transform_indices = @transform_2, window_bounds = array<i64: 1, 32>}, {transform_indices = @transform_3, window_bounds = array<i64: 2, 32>}]} {
    %c0 = arith.constant 0 : index
    %c0_0 = arith.constant 0 : index
    %0 = vector.load %arg1[%c0, %c0_0] : memref<2x256xf32, #tpu.memory_space<vmem>>, vector<2x256xf32>
    %1 = arith.truncf %0 : vector<2x256xf32> to vector<2x256xbf16>
    %c0_1 = arith.constant 0 : index
    %c0_2 = arith.constant 0 : index
    %2 = vector.load %arg2[%c0_1, %c0_2] : memref<256x32xbf16, #tpu.memory_space<vmem>>, vector<256x32xbf16>
    %cst = arith.constant dense<0.000000e+00> : vector<2x32xf32>
    %3 = tpu.matmul %1, %2, %cst {dimension_numbers = #tpu.dot_dimension_numbers<[1], [0], [0], [1], [0, 0, 1, 1], [], []>} : vector<2x256xbf16>, vector<256x32xbf16>, vector<2x32xf32> -> vector<2x32xf32>
    %c0_3 = arith.constant 0 : index
    %c0_4 = arith.constant 0 : index
    %4 = vector.load %arg3[%c0_3, %c0_4] : memref<1x32xf32, #tpu.memory_space<vmem>>, vector<1x32xf32>
    %5 = vector.broadcast %4 : vector<1x32xf32> to vector<2x32xf32>
    %6 = arith.addf %3, %5 : vector<2x32xf32>
    %cst_5 = arith.constant 0.000000e+00 : f32
    %7 = vector.broadcast %cst_5 : f32 to vector<2x32xf32>
    %8 = arith.maximumf %6, %7 : vector<2x32xf32>
    %c0_6 = arith.constant 0 : index
    %c0_7 = arith.constant 0 : index
    %9 = vector.load %arg4[%c0_6, %c0_7] : memref<2x32xf32, #tpu.memory_space<vmem>>, vector<2x32xf32>
    tpu.vector_store %arg4[%c0_6, %c0_7], %8 {strides = array<i32>} : memref<2x32xf32, #tpu.memory_space<vmem>>, vector<2x32xf32>,
    return
  }
  func.func @transform_0(%arg0: i32) -> (i32, i32) {
    %c0_i32 = arith.constant 0 : i32
    %c0_i32_0 = arith.constant 0 : i32
    return %arg0, %c0_i32 : i32, i32
  }
  func.func @transform_1(%arg0: i32) -> (i32, i32) {
    %c0_i32 = arith.constant 0 : i32
    %c0_i32_0 = arith.constant 0 : i32
    %c0_i32_1 = arith.constant 0 : i32
    return %c0_i32, %c0_i32_0 : i32, i32
  }
  func.func @transform_2(%arg0: i32) -> (i32, i32) {
    %c0_i32 = arith.constant 0 : i32
    %c0_i32_0 = arith.constant 0 : i32
    %c0_i32_1 = arith.constant 0 : i32
    return %c0_i32, %c0_i32_0 : i32, i32
  }
  func.func @transform_3(%arg0: i32) -> (i32, i32) {
    %c0_i32 = arith.constant 0 : i32
    %c0_i32_0 = arith.constant 0 : i32
    return %arg0, %c0_i32 : i32, i32
  }
}

</mosaic_0001>

<bundles_post_ra>
// kernel: forward.1
= control target key start
LH: loop header
LB: loop body
LE: loop exit
PB: predicated region body
PF: predicated region fallthrough
CT: control target
= control target key end

     0   :  { %8 = vsyncpa [#allocation3], 0  ;;  %s399_s0 = inlined_call_operand.vmem [shape: f32[2,256], index: 0, kind: input, shape index: {}]   ;;  %s400_s1 = inlined_call_operand.hbm [shape: bf16[256,32], index: 1, kind: input, shape index: {}]   ;;  %s401_s2 = inlined_call_operand.vmem [shape: f32[1,32], index: 2, kind: input, shape index: {}]   ;;  %s402_s3 = inlined_call_operand.hbm [shape: f32[2,32], index: 3, kind: output, shape index: {}]  }
   0x1   :  { %9 = vsyncpa [#allocation4], 0  ;;  %s345_s12 = smov [#allocation2]   ;;  %s297_s16 = scalar_lea.hbm %s400_s1, 2048 }
   0x2   :  { %s17_s13 = sshll.u32 %s345_s12, 4  ;;  %p298_p0 = scmp.ne.s32.totalorder %s400_s1, %s297_s16  ;;  %s18_s13 = int_to_ptr.vmem [resolvable:$true] %s17_s13 }
   0x3   :  { %p301_p1 = scmp.lt.u32.totalorder %s297_s16, %s400_s1 }
   0x5   :  { %p303_p2 = pnand %p301_p1, %p298_p0 }
   0x7   :  { %306 = shalt.err (!%p303_p2)
}
   0x8   :  { %s307_s21 = scalar_lea.vmem %s18_s13, 2048  ;;  %p312_p4 = scmp.lt.s32.totalorder %s18_s13, %s18_s13 }
   0x9   :  { %p308_p3 = scmp.ne.s32.totalorder %s18_s13, %s307_s21  ;;  %p313_p5 = scmp.lt.s32.totalorder %s307_s21, %s307_s21 }
   0xb   :  { %p314_p6 = por %p313_p5, %p312_p4 }
   0xd   :  { %p315_p7 = pnand %p314_p6, %p308_p3 }
   0xf   :  { %318 = shalt.err (!%p315_p7)
}
  0x10   :  { %s346_s22 = smov 64   ;;  %s347_s23 = smov 4  }
  0x11   :  { %23 = dma.hbm_to_vmem [thread:$0]  %s400_s1, 2048, %s18_s13, [#allocation3], %s346_s22, %s346_s22, %s347_s23  }
  0x12   :  { %341 = dma.done.wait [#allocation3], 2048  }
  0x13   :  { %342 = vsyncadd [#allocation3], 4294965248  ;;  %v281_v0 = vld [vmem:[#allocation2 + $0x40] sm:$0xff]   ;;  %v283_v2 = vld [vmem:[#allocation2 + $0x48] sm:$0xff]   ;;  %s348_s28 = smov [#allocation5]   ;;  %vm220_vm0 = vcmask 254976  }
  0x14   :  { %v282_v1 = vld [vmem:[#allocation2] sm:$0xff]   ;;  %255 = vmatprep.subr.bf16.mxu0 %v281_v0  ;;  %v284_v3 = vld [vmem:[#allocation2 + $0x8] sm:$0xff]   ;;  %v285_v4 = vld [vmem:[#allocation2 + $0x50] sm:$0xff]   ;;  %s228_s29 = sshll.u32 %s348_s28, 4  ;;  %s229_s29 = int_to_ptr.vmem [resolvable:$true] %s228_s29 }
  0x15   :  { %256 = vmatpush3.bf16.msra.mxu0 %v282_v1  ;;  %v286_v5 = vld [vmem:[#allocation2 + $0x10] sm:$0xff]   ;;  %v287_v6 = vld [vmem:[#allocation2 + $0x58] sm:$0xff]   ;;  %v289_v8 = vld [vmem:[#allocation2 + $0x60] sm:$0xff]   ;;  %s319_s30 = scalar_lea.vmem %s229_s29, 32  ;;  %p324_p9 = scmp.lt.s32.totalorder %s229_s29, %s229_s29 }
  0x16   :  { %257 = vmatprep.subr.bf16.mxu0 %v283_v2  ;;  %v288_v7 = vld [vmem:[#allocation2 + $0x18] sm:$0xff]   ;;  %v290_v9 = vld [vmem:[#allocation2 + $0x20] sm:$0xff]   ;;  %v291_v10 = vld [vmem:[#allocation2 + $0x68] sm:$0xff]   ;;  %p320_p8 = scmp.ne.s32.totalorder %s229_s29, %s319_s30  ;;  %p325_p10 = scmp.lt.s32.totalorder %s319_s30, %s319_s30 }
  0x17   :  { %v237_v11 = vld.sshfl [vmem:[%s399_s0] sm:$0x33 pattern:$0x76325410]  ;;  %v292_v13 = vld [vmem:[#allocation2 + $0x28] sm:$0xff]   ;;  %v293_v15 = vld [vmem:[#allocation2 + $0x70] sm:$0xff]  }
  0x18   :  { %v39_v12 = vcombine.high %v237_v11, %v237_v11  ;;  %v294_v16 = vld [vmem:[#allocation2 + $0x30] sm:$0xff]   ;;  %v295_v17 = vld [vmem:[#allocation2 + $0x78] sm:$0xff]   ;;  %v42_v19 = vpack.c.bf16 %v237_v11, %v237_v11  ;;  %v238_v21 = vld [vmem:[%s401_s2] ss:$0 sm:$0xff]  ;;  %p326_p11 = por %p325_p10, %p324_p9 }
  0x19   :  { %258 = vmatpush3.bf16.msra.mxu0 %v284_v3  ;;  %v296_v18 = vld [vmem:[#allocation2 + $0x38] sm:$0xff]  }
  0x1a   :  { %259 = vmatprep.subr.bf16.mxu0 %v285_v4  ;;  %v43_v14 = vpack.c.bf16 %v39_v12, %v39_v12  ;;  %p327_p12 = pnand %p326_p11, %p320_p8 }
  0x1c   :  { %211 = vmatprep.mubr.bf16.mxu0 %v43_v14 }
  0x1d   :  { %260 = vmatpush3.bf16.msra.mxu0 %v286_v5 }
  0x1e   :  { %261 = vmatprep.subr.bf16.mxu0 %v287_v6 }
  0x21   :  { %262 = vmatpush3.bf16.msra.mxu0 %v288_v7 }
  0x22   :  { %263 = vmatprep.subr.bf16.mxu0 %v289_v8 }
  0x25   :  { %264 = vmatpush3.bf16.msra.mxu0 %v290_v9 }
  0x26   :  { %265 = vmatprep.subr.bf16.mxu0 %v291_v10 }
  0x29   :  { %266 = vmatpush3.bf16.msra.mxu0 %v292_v13 }
  0x2a   :  { %267 = vmatprep.subr.bf16.mxu0 %v293_v15 }
  0x2d   :  { %268 = vmatpush3.bf16.msra.mxu0 %v294_v16 }
  0x2e   :  { %269 = vmatprep.subr.bf16.mxu0 %v295_v17 }
  0x31   :  { %270 = vmatpush3.bf16.msra.mxu0 %v296_v18 }
  0x34   :  { %212 = vmatmul.mubr.bf16.vlgmr.msra.gmra.mrb[0].mxu0 %v42_v19 }
 0x107   :  { %v271_v20 = vpop.f32.mrb[0].mxu0 }
 0x108   :  { %v272_v22 = vpop.f32.mrb[1].mxu0 }
 0x109   :  { %v273_v23 = vadd.f32 %v272_v22, %v271_v20  ;;  %v274_v24 = vpop.f32.mrb[2].mxu0 }
 0x10a   :  { %v275_v25 = vpop.f32.mrb[3].mxu0 }
 0x10b   :  { %v214_v26 = vadd.f32 %v273_v23, %v238_v21 }
 0x10d   :  { %v219_v27 = vmax.f32 %v214_v26, 0.0 }
 0x10f   :  { %221 = vst.msk [vmem:[#allocation5] sm:$0x3] %vm220_vm0, %v219_v27 }
 0x110   :  { %330 = shalt.err (!%p327_p12)
}
 0x111   :  { %s331_s5 = scalar_lea.hbm %s402_s3, 32 }
 0x112   :  { %p332_p13 = scmp.ne.s32.totalorder %s402_s3, %s331_s5  ;;  %p335_p0 = scmp.lt.u32.totalorder %s331_s5, %s402_s3 }
 0x114   :  { %p337_p1 = pnand %p335_p0, %p332_p13 }
 0x116   :  { %340 = shalt.err (!%p337_p1)
}
 0x117   :  { %231 = dma.vmem_to_hbm [thread:$0]  %s229_s29, 32, %s402_s3, [#allocation4]  }
 0x118   :  { %343 = dma.done.wait [#allocation4], 32  }
 0x119   :  { %344 = vsyncadd [#allocation4], 4294967264 }
 0x11a   :  { %235 = vsyncpa [#allocation3], 1 }
 0x11b   :  { %236 = vsyncpa [#allocation4], 1 }

</bundles_post_ra>
